<compile_context>
chip_gen: v7x
topology: tpu7x:2x2x1
jax: 0.10.0
libtpu: 0.0.40
codegen_flags: <defaults>
</compile_context>

<pallas_src>
import jax
import jax.numpy as jnp
from jax.experimental import pallas as pl
from jax.experimental.pallas import tpu as pltpu


def _round_up(x, m):
    return (x + m - 1) // m * m


def _simple_nn_kernel(x_ref, w_ref, b_ref, o_ref):
    # x_ref: (TB, ROW_W) VMEM   w_ref: (ROW_W, P) VMEM   b_ref: (1, 1) SMEM   o_ref: (TB, P) VMEM
    x = x_ref[...].astype(jnp.float32)                       # upcast in-kernel (cheap VPU cast)
    z = jnp.dot(x, w_ref[...], preferred_element_type=jnp.float32) + b_ref[0, 0]
    o_ref[...] = (1.0 / (1.0 + jnp.exp(-z))).astype(o_ref.dtype)   # exact sigmoid (exp on EUP)


def simple_nn_forward(x, weight, bias, *, x_bytes_per_step=4 * 1024 * 1024):
    """x: (B, D), weight: (1, D) (PyTorch nn.Linear layout), bias: (1,)  ->  (B, 1)."""
    B, D = x.shape
    itemsize = jnp.dtype(x.dtype).itemsize
    w_row = weight.astype(jnp.float32).reshape(1, D)
    b_smem = bias.astype(jnp.float32).reshape(1, 1)          # scalar bias lives in SMEM

    # Lane packing: put P = 128//D samples in each 128-lane row when D is narrow and
    # B divides evenly; otherwise fall back to one sample per row (still correct).
    if D < 128 and 128 % D == 0 and B % (128 // D) == 0:
        pack = 128 // D
    else:
        pack = 1

    rows = B // pack
    row_w = pack * D
    if pack > 1:
        x_kern = x.reshape(rows, row_w)                       # free row-major view
        eye = jnp.eye(pack, dtype=jnp.float32)
        # Block-diagonal weight: w_mat[p*D + d, p] = w[d]  ->  segmented lane reduce as a matmul.
        w_mat = (w_row.reshape(D)[None, :, None] * eye[:, None, :]).reshape(row_w, pack)
    else:
        x_kern = x
        w_mat = w_row.reshape(D, 1)                           # W.T

    # Batch tile sized by padded-VMEM byte budget (lane dim rounds up to 128),
    # then capped so large inputs still yield >= ~8 grid steps (v7x 2-TC sharding).
    lane_w = _round_up(row_w, 128)
    tb = max(8, (x_bytes_per_step // (lane_w * itemsize)) // 8 * 8)
    tb = min(tb, max(8, _round_up(pl.cdiv(rows, 8), 8)))
    tb = min(tb, _round_up(rows, 8))
    num_tiles = pl.cdiv(rows, tb)                             # ragged last block, no jnp.pad of x

    out2d = pl.pallas_call(
        _simple_nn_kernel,
        out_shape=jax.ShapeDtypeStruct((rows, pack), x.dtype),
        grid=(num_tiles,),
        in_specs=[
            pl.BlockSpec((tb, row_w), lambda i: (i, 0)),            # streamed, lane-dense x slab
            pl.BlockSpec((row_w, pack), lambda i: (0, 0)),          # tiny resident weight block
            pl.BlockSpec(memory_space=pltpu.MemorySpace.SMEM),      # bias scalar in SMEM
        ],
        out_specs=pl.BlockSpec((tb, pack), lambda i: (i, 0)),       # full-sublane output block
        compiler_params=pltpu.CompilerParams(
            dimension_semantics=("parallel",),
            vmem_limit_bytes=48 * 1024 * 1024,
        ),
        cost_estimate=pl.CostEstimate(
            flops=2 * B * D,
            transcendentals=B,
            bytes_accessed=B * D * itemsize + B * itemsize + row_w * pack * 4,
        ),
    )(x_kern, w_mat, b_smem)

    # (rows, pack) row-major is exactly batch order; restore (B, 1).
    return out2d.reshape(B, 1)


if __name__ == "__main__":
    input_dim = 32

    key = jax.random.PRNGKey(0)
    kx, kw, kb, kx2, kx3 = jax.random.split(key, 5)

    # Deterministic params mimicking nn.Linear default init (U[-1/sqrt(D), 1/sqrt(D)]).
    bound = 1.0 / jnp.sqrt(jnp.float32(input_dim))
    weight = jax.random.uniform(kw, (1, input_dim), jnp.float32, -bound, bound)  # (out=1, in=D)
    bias = jax.random.uniform(kb, (1,), jnp.float32, -bound, bound)

    # Small shape consistent with the module (packed path: 4 samples per 128-lane row).
    x = jax.random.normal(kx, (8, input_dim), jnp.float32)
    out = jax.block_until_ready(simple_nn_forward(x, weight, bias))
    ref = jax.nn.sigmoid(x @ weight.T + bias)
    assert out.shape == (8, 1)
    assert jnp.allclose(out, ref, atol=2e-3, rtol=2e-3), float(jnp.max(jnp.abs(out - ref)))

    # Multi-tile grid with a ragged last block (75 packed rows, no padding copy of x).
    x2 = jax.random.normal(kx2, (300, input_dim), jnp.float32)
    out2 = jax.block_until_ready(simple_nn_forward(x2, weight, bias))
    ref2 = jax.nn.sigmoid(x2 @ weight.T + bias)
    assert out2.shape == (300, 1)
    assert jnp.allclose(out2, ref2, atol=2e-3, rtol=2e-3), float(jnp.max(jnp.abs(out2 - ref2)))

    # Batch not divisible by the packing factor -> general (one-sample-per-row) path.
    x3 = jax.random.normal(kx3, (10, input_dim), jnp.float32)
    out3 = jax.block_until_ready(simple_nn_forward(x3, weight, bias))
    ref3 = jax.nn.sigmoid(x3 @ weight.T + bias)
    assert out3.shape == (10, 1)
    assert jnp.allclose(out3, ref3, atol=2e-3, rtol=2e-3), float(jnp.max(jnp.abs(out3 - ref3)))

    print("KERNEL_OK")
</pallas_src>

<mosaic_0001>
module attributes {stable_mosaic.version = 11 : i64} {
  func.func @_simple_nn_kernel(%arg0: i32, %arg1: memref<8x128xf32, #tpu.memory_space<vmem>>, %arg2: memref<128x4xf32, #tpu.memory_space<vmem>>, %arg3: memref<1x1xf32, #tpu.memory_space<smem>>, %arg4: memref<8x4xf32, #tpu.memory_space<vmem>>) attributes {dimension_semantics = [#tpu.dimension_semantics<parallel>], iteration_bounds = array<i64: 1>, scalar_prefetch = 0 : i64, scratch_operands = 0 : i64, tpu.core_type = #tpu.core_type<tc>, window_params = [{transform_indices = @transform_0, window_bounds = array<i64: 8, 128>}, {pipeline_mode = #tpu.pipeline_mode<synchronous>, transform_indices = @transform_1, window_bounds = array<i64: 128, 4>}, {transform_indices = @transform_2, window_bounds = array<i64: 1, 1>}, {transform_indices = @transform_3, window_bounds = array<i64: 8, 4>}]} {
    %c0 = arith.constant 0 : index
    %c0_0 = arith.constant 0 : index
    %0 = vector.load %arg1[%c0, %c0_0] : memref<8x128xf32, #tpu.memory_space<vmem>>, vector<8x128xf32>
    %c0_1 = arith.constant 0 : index
    %c0_2 = arith.constant 0 : index
    %1 = vector.load %arg2[%c0_1, %c0_2] : memref<128x4xf32, #tpu.memory_space<vmem>>, vector<128x4xf32>
    %cst = arith.constant dense<0.000000e+00> : vector<8x4xf32>
    %2 = tpu.matmul %0, %1, %cst {dimension_numbers = #tpu.dot_dimension_numbers<[1], [0], [0], [1], [0, 0, 1, 1], [], []>} : vector<8x128xf32>, vector<128x4xf32>, vector<8x4xf32> -> vector<8x4xf32>
    %c0_3 = arith.constant 0 : index
    %c0_4 = arith.constant 0 : index
    %3 = memref.load %arg3[%c0_3, %c0_4] : memref<1x1xf32, #tpu.memory_space<smem>>
    %4 = vector.broadcast %3 : f32 to vector<8x4xf32>
    %5 = arith.addf %2, %4 : vector<8x4xf32>
    %cst_5 = arith.constant 0.000000e+00 : f32
    %6 = vector.broadcast %cst_5 : f32 to vector<8x4xf32>
    %7 = arith.subf %6, %5 : vector<8x4xf32>
    %8 = math.exp %7 : vector<8x4xf32>
    %cst_6 = arith.constant 1.000000e+00 : f32
    %9 = vector.broadcast %cst_6 : f32 to vector<8x4xf32>
    %10 = arith.addf %9, %8 : vector<8x4xf32>
    %cst_7 = arith.constant 1.000000e+00 : f32
    %11 = vector.broadcast %cst_7 : f32 to vector<8x4xf32>
    %12 = arith.divf %11, %10 : vector<8x4xf32>
    %c0_8 = arith.constant 0 : index
    %c0_9 = arith.constant 0 : index
    %13 = vector.load %arg4[%c0_8, %c0_9] : memref<8x4xf32, #tpu.memory_space<vmem>>, vector<8x4xf32>
    tpu.vector_store %arg4[%c0_8, %c0_9], %12 {strides = array<i32>} : memref<8x4xf32, #tpu.memory_space<vmem>>, vector<8x4xf32>,
    return
  }
  func.func @transform_0(%arg0: i32) -> (i32, i32) {
    %c0_i32 = arith.constant 0 : i32
    %c0_i32_0 = arith.constant 0 : i32
    return %arg0, %c0_i32 : i32, i32
  }
  func.func @transform_1(%arg0: i32) -> (i32, i32) {
    %c0_i32 = arith.constant 0 : i32
    %c0_i32_0 = arith.constant 0 : i32
    %c0_i32_1 = arith.constant 0 : i32
    return %c0_i32, %c0_i32_0 : i32, i32
  }
  func.func @transform_2(%arg0: i32) -> (i32, i32) {
    %c0_i32 = arith.constant 0 : i32
    %c0_i32_0 = arith.constant 0 : i32
    %c0_i32_1 = arith.constant 0 : i32
    return %c0_i32, %c0_i32_0 : i32, i32
  }
  func.func @transform_3(%arg0: i32) -> (i32, i32) {
    %c0_i32 = arith.constant 0 : i32
    %c0_i32_0 = arith.constant 0 : i32
    return %arg0, %c0_i32 : i32, i32
  }
}

</mosaic_0001>

<bundles_post_ra>
// kernel: tpu_custom_call.1
= control target key start
LH: loop header
LB: loop body
LE: loop exit
PB: predicated region body
PF: predicated region fallthrough
CT: control target
= control target key end

     0   :  { %9 = vsyncpa [#allocation4], 0  ;;  %v239_v2 = vmov 0.0|0.0   ;;  %vm240_vm0 = vmmov 0   ;;  %v241_v6 = vmov 0.0   ;;  %vm111_vm1 = vcmask 31744   ;;  %s331_s0 = inlined_call_operand.vmem [shape: f32[2,128], index: 0, kind: input, shape index: {}]   ;;  %s332_s1 = inlined_call_operand.vmem [shape: f32[128,4], index: 1, kind: input, shape index: {}]   ;;  %s333_s2 = inlined_call_operand.<no memory space> [shape: f32[1,1], index: 2, kind: input, shape index: {}]   ;;  %s334_s3 = inlined_call_operand.hbm [shape: f32[2,4], index: 3, kind: output, shape index: {}]  }
   0x1   :  { %v17_v0 = vld [vmem:[%s332_s1] sm:$0xff]  ;;  %v18_v1 = vld [vmem:[%s332_s1 + $0x8] sm:$0xff]  ;;  %181 = vmatprep.subr.bf16.mxu0 %v239_v2  ;;  %v19_v4 = vld [vmem:[%s332_s1 + $0x10] sm:$0xff]  ;;  %178 = vmatprep.mubr.msk.f32.mxu0 %vm240_vm0, %v241_v6  ;;  %v34_v27 = vstv %s333_s2 }
   0x2   :  { %v182_v3 = vpack.c.bf16 %v18_v1, %v17_v0  ;;  %v20_v5 = vld [vmem:[%s332_s1 + $0x18] sm:$0xff]  ;;  %v21_v8 = vld [vmem:[%s332_s1 + $0x20] sm:$0xff]  ;;  %v22_v9 = vld [vmem:[%s332_s1 + $0x28] sm:$0xff] }
   0x3   :  { %v185_v7 = vpack.c.bf16 %v20_v5, %v19_v4  ;;  %v188_v10 = vpack.c.bf16 %v22_v9, %v21_v8  ;;  %v23_v11 = vld [vmem:[%s332_s1 + $0x30] sm:$0xff]  ;;  %v24_v12 = vld [vmem:[%s332_s1 + $0x38] sm:$0xff]  ;;  %v25_v14 = vld [vmem:[%s332_s1 + $0x40] sm:$0xff] }
   0x4   :  { %183 = vmatpush3.bf16.msra.mxu0 %v182_v3  ;;  %v191_v13 = vpack.c.bf16 %v24_v12, %v23_v11  ;;  %v26_v15 = vld [vmem:[%s332_s1 + $0x48] sm:$0xff]  ;;  %v27_v17 = vld [vmem:[%s332_s1 + $0x50] sm:$0xff]  ;;  %v28_v18 = vld [vmem:[%s332_s1 + $0x58] sm:$0xff] }
   0x5   :  { %184 = vmatprep.subr.bf16.mxu0 %v239_v2  ;;  %v194_v16 = vpack.c.bf16 %v26_v15, %v25_v14  ;;  %v197_v19 = vpack.c.bf16 %v28_v18, %v27_v17  ;;  %v29_v20 = vld [vmem:[%s332_s1 + $0x60] sm:$0xff]  ;;  %v30_v21 = vld [vmem:[%s332_s1 + $0x68] sm:$0xff]  ;;  %v31_v23 = vld [vmem:[%s332_s1 + $0x70] sm:$0xff] }
   0x6   :  { %v200_v22 = vpack.c.bf16 %v30_v21, %v29_v20  ;;  %v32_v24 = vld [vmem:[%s332_s1 + $0x78] sm:$0xff]  ;;  %v16_v26 = vld [vmem:[%s331_s0] sm:$0xff] }
   0x7   :  { %v203_v25 = vpack.c.bf16 %v32_v24, %v31_v23 }
   0x8   :  { %186 = vmatpush3.bf16.msra.mxu0 %v185_v7 }
   0x9   :  { %187 = vmatprep.subr.bf16.mxu0 %v239_v2 }
   0xc   :  { %189 = vmatpush3.bf16.msra.mxu0 %v188_v10 }
   0xd   :  { %190 = vmatprep.subr.bf16.mxu0 %v239_v2 }
  0x10   :  { %192 = vmatpush3.bf16.msra.mxu0 %v191_v13 }
  0x11   :  { %193 = vmatprep.subr.bf16.mxu0 %v239_v2 }
  0x14   :  { %195 = vmatpush3.bf16.msra.mxu0 %v194_v16 }
  0x15   :  { %196 = vmatprep.subr.bf16.mxu0 %v239_v2 }
  0x18   :  { %198 = vmatpush3.bf16.msra.mxu0 %v197_v19 }
  0x19   :  { %199 = vmatprep.subr.bf16.mxu0 %v239_v2 }
  0x1c   :  { %201 = vmatpush3.bf16.msra.mxu0 %v200_v22 }
  0x1d   :  { %202 = vmatprep.subr.bf16.mxu0 %v239_v2 }
  0x20   :  { %204 = vmatpush3.bf16.msra.mxu0 %v203_v25 }
  0x23   :  { %179 = vmatmul.mubr.f32.vlgmr.msra.gmra.mrb[0].mxu0 %v16_v26 }
  0xf6   :  { %v101_v28 = vpop.f32.mrb[0].mxu0 }
  0xf7   :  { %v102_v29 = vadd.f32 %v101_v28, %v34_v27  ;;  %v180_v30 = vpop.f32.mrb[1].mxu0 }
  0xf9   :  { %v105_v31 = vsub.f32 0.0, %v102_v29 }
  0xfb   :  { %v106_v32 = vmul.f32 1.442695, %v105_v31 }
  0xfd   :  { %211 = vpow2.f32 %v106_v32 }
 0x107   :  { %v212_v33 = vpop.eup %211 }
 0x108   :  { %v108_v34 = vadd.f32 1.0, %v212_v33 }
 0x10a   :  { %213 = vrcp.f32 %v108_v34 }
 0x114   :  { %v214_v35 = vpop.eup %213 }
 0x115   :  { %112 = vst.msk [vmem:[#allocation3] sm:$0xff] %vm111_vm1, %v214_v35 }
 0x116   :  { %117 = vsyncadd [#allocation4], 96  ;;  %s242_s1 = smov [#allocation3]  }
 0x117   :  { %s118_s0 = sshll.u32 %s242_s1, 4  ;;  %s119_s0 = int_to_ptr.vmem [resolvable:$true] %s118_s0 }
 0x118   :  { %s215_s21 = scalar_lea.vmem %s119_s0, 32  ;;  %s219_s22 = scalar_lea.vmem %s119_s0, 128 }
 0x119   :  { %p216_p0 = scmp.ne.s32.totalorder %s119_s0, %s215_s21  ;;  %p220_p1 = scmp.lt.s32.totalorder %s119_s0, %s119_s0 }
 0x11a   :  { %p221_p2 = scmp.lt.s32.totalorder %s219_s22, %s215_s21 }
 0x11c   :  { %p222_p3 = por %p221_p2, %p220_p1 }
 0x11e   :  { %p223_p4 = pnand %p222_p3, %p216_p0 }
 0x120   :  { %226 = shalt.err (!%p223_p4)
}
 0x121   :  { %s227_s24 = scalar_lea.hbm %s334_s3, 32 }
 0x122   :  { %p228_p5 = scmp.ne.s32.totalorder %s334_s3, %s227_s24  ;;  %p231_p6 = scmp.lt.u32.totalorder %s227_s24, %s334_s3 }
 0x124   :  { %p233_p7 = pnand %p231_p6, %p228_p5 }
 0x126   :  { %236 = shalt.err (!%p233_p7)
}
 0x127   :  { %s243_s29 = smov 32   ;;  %s244_s30 = smov 2  }
 0x128   :  { %124 = dma.vmem_to_hbm [thread:$0]  %s119_s0, 32, %s334_s3, [#allocation4], %s243_s29, %s243_s29, %s244_s30  }
 0x129   :  { %237 = dma.done.wait [#allocation4], 128  }
 0x12a   :  { %238 = vsyncadd [#allocation4], 4294967168 }
 0x12b   :  { %128 = vsyncpa [#allocation4], 1 }

</bundles_post_ra>
